<compile_context>
chip_gen: v6e
topology: v6e:2x2x1
jax: 0.10.0
libtpu: 0.0.40
codegen_flags: <defaults>
</compile_context>

<pallas_src>
import functools

import jax
import jax.numpy as jnp
from jax.experimental import pallas as pl
from jax.experimental.pallas import tpu as pltpu


def _round_up(x, m):
    return (x + m - 1) // m * m


# ----------------------------- Pallas kernel -------------------------------

def _matmul_bn_relu_kernel(a_ref, b_ref, scale_ref, shift_ref, o_ref, acc_ref,
                           *, relu):
    # a_ref:     (tm, tk)  bf16 patch tile
    # b_ref:     (tk, tn)  bf16 weight tile
    # scale_ref: (1,  tn)  f32 folded BN scale
    # shift_ref: (1,  tn)  f32 folded BN shift (+ conv bias)
    # o_ref:     (tm, tn)  f32 output tile
    # acc_ref:   (tm, tn)  f32 accumulator scratch
    k = pl.program_id(2)

    @pl.when(k == 0)
    def _():
        acc_ref[...] = jnp.zeros_like(acc_ref)

    acc_ref[...] += jnp.dot(a_ref[...], b_ref[...],
                            preferred_element_type=jnp.float32)

    @pl.when(k == pl.num_programs(2) - 1)
    def _():
        y = acc_ref[...] * scale_ref[...] + shift_ref[...]   # f32 epilogue (VPU)
        if relu:
            y = jnp.maximum(y, 0.0)
        o_ref[...] = y.astype(o_ref.dtype)


def _fused_matmul_bn_relu(a, b, scale, shift, *, relu=True):
    """a: (M, K), b: (K, OC), scale/shift: (OC,) f32 -> (M, OC) f32."""
    M, K = a.shape
    K2, OC = b.shape
    assert K == K2

    # ---- TPU-friendly padding / tile selection -----------------------------
    OC_pad = _round_up(OC, 128)                  # lane-dense output stores
    tn = 256 if OC_pad % 256 == 0 else 128

    if K <= 512:
        tk = _round_up(K, 16)                    # bf16 sublane packing
        K_pad = tk
    else:
        tk = 512
        K_pad = _round_up(K, tk)

    if M <= 512:
        tm = _round_up(M, 16)
        M_pad = tm
    else:
        tm = 512
        M_pad = _round_up(M, tm)

    # bf16 operands (MXU-native, half the HBM/DMA bytes); f32 accumulate.
    a_p = jnp.pad(a.astype(jnp.bfloat16), ((0, M_pad - M), (0, K_pad - K)))
    b_p = jnp.pad(b.astype(jnp.bfloat16), ((0, K_pad - K), (0, OC_pad - OC)))
    # Benign values in padded channel lanes (sliced off after the kernel).
    scale_p = jnp.pad(scale.astype(jnp.float32), (0, OC_pad - OC),
                      constant_values=1.0).reshape(1, OC_pad)
    shift_p = jnp.pad(shift.astype(jnp.float32), (0, OC_pad - OC),
                      constant_values=0.0).reshape(1, OC_pad)

    grid = (M_pad // tm, OC_pad // tn, K_pad // tk)

    # Double-buffered VMEM footprint (+ accumulator scratch) with headroom.
    vmem_bytes = (2 * tm * tk * 2 + 2 * tk * tn * 2 + 2 * tm * tn * 4
                  + tm * tn * 4 + 4 * 2 * tn * 4)
    vmem_limit = int(min(vmem_bytes + (16 << 20), 40 << 20))

    flops = 2 * M_pad * K_pad * OC_pad
    bytes_accessed = (M_pad * K_pad * 2 + K_pad * OC_pad * 2
                      + M_pad * OC_pad * 4)

    out = pl.pallas_call(
        functools.partial(_matmul_bn_relu_kernel, relu=relu),
        out_shape=jax.ShapeDtypeStruct((M_pad, OC_pad), jnp.float32),
        grid_spec=pltpu.PrefetchScalarGridSpec(
            num_scalar_prefetch=0,
            grid=grid,
            in_specs=[
                pl.BlockSpec((tm, tk), lambda i, j, k: (i, k)),
                pl.BlockSpec((tk, tn), lambda i, j, k: (k, j)),
                pl.BlockSpec((1, tn), lambda i, j, k: (0, j)),
                pl.BlockSpec((1, tn), lambda i, j, k: (0, j)),
            ],
            out_specs=pl.BlockSpec((tm, tn), lambda i, j, k: (i, j)),
            scratch_shapes=[pltpu.VMEM((tm, tn), jnp.float32)],
        ),
        compiler_params=pltpu.CompilerParams(
            dimension_semantics=("parallel", "parallel", "arbitrary"),
            vmem_limit_bytes=vmem_limit,
        ),
        cost_estimate=pl.CostEstimate(
            flops=flops, transcendentals=0, bytes_accessed=bytes_accessed),
    )(a_p, b_p, scale_p, shift_p)

    if M_pad != M or OC_pad != OC:
        out = out[:M, :OC]
    return out


# ------------------------------ glue (jitted) --------------------------------

def _im2col(x, kh, kw, stride, padding, dilation):
    """x: (N, C, H, W) -> patches (N*OH*OW, C*KH*KW), plus (OH, OW)."""
    n, c, h, w = x.shape
    sh = sw = stride
    ph = pw = padding
    dh = dw = dilation
    oh = (h + 2 * ph - dh * (kh - 1) - 1) // sh + 1
    ow = (w + 2 * pw - dw * (kw - 1) - 1) // sw + 1
    xp = jnp.pad(x, ((0, 0), (0, 0), (ph, ph), (pw, pw)))

    cols = []
    for i in range(kh):
        for j in range(kw):
            hi = i * dh
            wj = j * dw
            patch = xp[:, :, hi:hi + sh * oh:sh, wj:wj + sw * ow:sw]
            cols.append(patch)  # (N, C, OH, OW)
    stacked = jnp.stack(cols, axis=0).reshape(kh, kw, n, c, oh, ow)
    patches = jnp.transpose(stacked, (2, 4, 5, 3, 0, 1))  # (N,OH,OW,C,KH,KW)
    return patches.reshape(n * oh * ow, c * kh * kw), oh, ow


@functools.partial(jax.jit,
                   static_argnames=("kernel_size", "stride", "padding",
                                    "dilation", "relu"))
def _basic_conv_forward(x, weight, scale, shift, *, kernel_size, stride,
                        padding, dilation, relu):
    n, c, h, w = x.shape
    oc = weight.shape[0]
    patches, oh, ow = _im2col(x, kernel_size, kernel_size, stride, padding,
                              dilation)                       # (M, K)
    b = weight.reshape(oc, -1).T                              # (K, OC)
    out_mat = _fused_matmul_bn_relu(patches, b, scale, shift, relu=relu)
    out = out_mat.reshape(n, oh, ow, oc)
    return jnp.transpose(out, (0, 3, 1, 2))                   # NCHW


# ------------------------------ BasicConv ------------------------------------

class BasicConvPallas:
    """Mirrors BasicConv(in_planes, out_planes, kernel_size, ...) forward."""

    def __init__(self, in_planes, out_planes, kernel_size, stride=1,
                 padding=0, dilation=1, groups=1, relu=True, bn=True,
                 bias=False, key=None):
        assert groups == 1, "groups > 1 not used by this instantiation"
        # TODO(synk): grouped convolution path not implemented (groups=1 only).
        self.in_planes = in_planes
        self.out_planes = out_planes
        self.kernel_size = kernel_size
        self.stride = stride
        self.padding = padding
        self.dilation = dilation
        self.relu = relu
        self.use_bn = bn
        self.use_bias = bias

        if key is None:
            key = jax.random.PRNGKey(0)
        k_w, k_b, k_g, k_be, k_m, k_v = jax.random.split(key, 6)

        fan_in = in_planes * kernel_size * kernel_size
        bound = 1.0 / jnp.sqrt(fan_in)
        self.weight = jax.random.uniform(
            k_w, (out_planes, in_planes, kernel_size, kernel_size),
            minval=-bound, maxval=bound, dtype=jnp.float32)
        self.bias = (jax.random.uniform(k_b, (out_planes,), minval=-bound,
                                        maxval=bound, dtype=jnp.float32)
                     if bias else None)

        if bn:
            self.gamma = 1.0 + 0.1 * jax.random.normal(k_g, (out_planes,),
                                                       dtype=jnp.float32)
            self.beta = 0.1 * jax.random.normal(k_be, (out_planes,),
                                                dtype=jnp.float32)
            self.running_mean = 0.1 * jax.random.normal(k_m, (out_planes,),
                                                        dtype=jnp.float32)
            self.running_var = jnp.abs(
                1.0 + 0.1 * jax.random.normal(k_v, (out_planes,),
                                              dtype=jnp.float32))
            self.eps = 1e-5

    def _folded_scale_shift(self):
        if self.use_bn:
            scale = self.gamma / jnp.sqrt(self.running_var + self.eps)
            mean = self.running_mean
            if self.bias is not None:
                mean = mean - self.bias
            shift = self.beta - mean * scale
        else:
            scale = jnp.ones((self.out_planes,), jnp.float32)
            shift = (self.bias if self.bias is not None
                     else jnp.zeros((self.out_planes,), jnp.float32))
        return scale, shift

    def __call__(self, x):
        # x: (N, C, H, W) float32  (NCHW, same as PyTorch)
        scale, shift = self._folded_scale_shift()
        return _basic_conv_forward(
            x, self.weight, scale, shift,
            kernel_size=self.kernel_size, stride=self.stride,
            padding=self.padding, dilation=self.dilation, relu=self.relu)


# --------------------------------- main ---------------------------------------

if __name__ == "__main__":
    key = jax.random.PRNGKey(0)
    k_x, k_p = jax.random.split(key)

    # Small shapes: BasicConv(4, 8, kernel_size=3, stride=1, padding=1)
    N, C, H, W = 2, 4, 16, 16
    x = jax.random.normal(k_x, (N, C, H, W), dtype=jnp.float32)

    mod = BasicConvPallas(in_planes=C, out_planes=8, kernel_size=3,
                          stride=1, padding=1, relu=True, bn=True,
                          bias=False, key=k_p)

    y = mod(x)
    jax.block_until_ready(y)
    assert y.shape == (N, 8, H, W), y.shape

    # Reference with the same bf16 operand precision as the kernel
    # (f32 accumulate), then eval-mode BN affine + ReLU in f32.
    ref = jax.lax.conv_general_dilated(
        x.astype(jnp.bfloat16), mod.weight.astype(jnp.bfloat16),
        window_strides=(1, 1), padding=((1, 1), (1, 1)),
        dimension_numbers=("NCHW", "OIHW", "NCHW"),
        preferred_element_type=jnp.float32)
    scale = mod.gamma / jnp.sqrt(mod.running_var + mod.eps)
    shift = mod.beta - mod.running_mean * scale
    ref = jnp.maximum(ref * scale[None, :, None, None]
                      + shift[None, :, None, None], 0.0)
    assert jnp.allclose(y, ref, atol=2e-2, rtol=2e-2), (
        float(jnp.max(jnp.abs(y - ref))))

    print("KERNEL_OK")
</pallas_src>

<mosaic_0001>
module attributes {stable_mosaic.version = 11 : i64} {
  func.func @_matmul_bn_relu_kernel(%arg0: i32, %arg1: i32, %arg2: i32, %arg3: memref<512x48xbf16, #tpu.memory_space<vmem>>, %arg4: memref<48x128xbf16, #tpu.memory_space<vmem>>, %arg5: memref<1x128xf32, #tpu.memory_space<vmem>>, %arg6: memref<1x128xf32, #tpu.memory_space<vmem>>, %arg7: memref<512x128xf32, #tpu.memory_space<vmem>>, %arg8: memref<512x128xf32, #tpu.memory_space<vmem>>) attributes {dimension_semantics = [#tpu.dimension_semantics<parallel>, #tpu.dimension_semantics<parallel>, #tpu.dimension_semantics<arbitrary>], iteration_bounds = array<i64: 1, 1, 1>, scalar_prefetch = 0 : i64, scratch_operands = 1 : i64, tpu.core_type = #tpu.core_type<tc>, window_params = [{transform_indices = @transform_0, window_bounds = array<i64: 512, 48>}, {transform_indices = @transform_1, window_bounds = array<i64: 48, 128>}, {transform_indices = @transform_2, window_bounds = array<i64: 1, 128>}, {transform_indices = @transform_3, window_bounds = array<i64: 1, 128>}, {transform_indices = @transform_4, window_bounds = array<i64: 512, 128>}]} {
    %c0_i32 = arith.constant 0 : i32
    %0 = arith.cmpi eq, %arg2, %c0_i32 : i32
    %1 = arith.extui %0 : i1 to i32
    %c0_i32_0 = arith.constant 0 : i32
    %2 = arith.cmpi ne, %1, %c0_i32_0 : i32
    scf.if %2 {
      %cst_10 = arith.constant 0.000000e+00 : f32
      %12 = vector.broadcast %cst_10 : f32 to vector<512x128xf32>
      %c0_11 = arith.constant 0 : index
      %c0_12 = arith.constant 0 : index
      %13 = vector.load %arg8[%c0_11, %c0_12] : memref<512x128xf32, #tpu.memory_space<vmem>>, vector<512x128xf32>
      tpu.vector_store %arg8[%c0_11, %c0_12], %12 {strides = array<i32>} : memref<512x128xf32, #tpu.memory_space<vmem>>, vector<512x128xf32>,
    } else {
    }
    %c0 = arith.constant 0 : index
    %c0_1 = arith.constant 0 : index
    %3 = vector.load %arg8[%c0, %c0_1] : memref<512x128xf32, #tpu.memory_space<vmem>>, vector<512x128xf32>
    %c0_2 = arith.constant 0 : index
    %c0_3 = arith.constant 0 : index
    %4 = vector.load %arg3[%c0_2, %c0_3] : memref<512x48xbf16, #tpu.memory_space<vmem>>, vector<512x48xbf16>
    %c0_4 = arith.constant 0 : index
    %c0_5 = arith.constant 0 : index
    %5 = vector.load %arg4[%c0_4, %c0_5] : memref<48x128xbf16, #tpu.memory_space<vmem>>, vector<48x128xbf16>
    %cst = arith.constant dense<0.000000e+00> : vector<512x128xf32>
    %6 = tpu.matmul %4, %5, %cst {dimension_numbers = #tpu.dot_dimension_numbers<[1], [0], [0], [1], [0, 0, 1, 1], [], []>} : vector<512x48xbf16>, vector<48x128xbf16>, vector<512x128xf32> -> vector<512x128xf32>
    %7 = arith.addf %3, %6 : vector<512x128xf32>
    %c0_6 = arith.constant 0 : index
    %c0_7 = arith.constant 0 : index
    %8 = vector.load %arg8[%c0_6, %c0_7] : memref<512x128xf32, #tpu.memory_space<vmem>>, vector<512x128xf32>
    tpu.vector_store %arg8[%c0_6, %c0_7], %7 {strides = array<i32>} : memref<512x128xf32, #tpu.memory_space<vmem>>, vector<512x128xf32>,
    %c0_i32_8 = arith.constant 0 : i32
    %9 = arith.cmpi eq, %arg2, %c0_i32_8 : i32
    %10 = arith.extui %9 : i1 to i32
    %c0_i32_9 = arith.constant 0 : i32
    %11 = arith.cmpi ne, %10, %c0_i32_9 : i32
    scf.if %11 {
      %c0_10 = arith.constant 0 : index
      %c0_11 = arith.constant 0 : index
      %12 = vector.load %arg8[%c0_10, %c0_11] : memref<512x128xf32, #tpu.memory_space<vmem>>, vector<512x128xf32>
      %c0_12 = arith.constant 0 : index
      %c0_13 = arith.constant 0 : index
      %13 = vector.load %arg5[%c0_12, %c0_13] : memref<1x128xf32, #tpu.memory_space<vmem>>, vector<1x128xf32>
      %14 = vector.broadcast %13 : vector<1x128xf32> to vector<512x128xf32>
      %15 = arith.mulf %12, %14 : vector<512x128xf32>
      %c0_14 = arith.constant 0 : index
      %c0_15 = arith.constant 0 : index
      %16 = vector.load %arg6[%c0_14, %c0_15] : memref<1x128xf32, #tpu.memory_space<vmem>>, vector<1x128xf32>
      %17 = vector.broadcast %16 : vector<1x128xf32> to vector<512x128xf32>
      %18 = arith.addf %15, %17 : vector<512x128xf32>
      %cst_16 = arith.constant 0.000000e+00 : f32
      %19 = vector.broadcast %cst_16 : f32 to vector<512x128xf32>
      %20 = arith.maximumf %18, %19 : vector<512x128xf32>
      %c0_17 = arith.constant 0 : index
      %c0_18 = arith.constant 0 : index
      %21 = vector.load %arg7[%c0_17, %c0_18] : memref<512x128xf32, #tpu.memory_space<vmem>>, vector<512x128xf32>
      tpu.vector_store %arg7[%c0_17, %c0_18], %20 {strides = array<i32>} : memref<512x128xf32, #tpu.memory_space<vmem>>, vector<512x128xf32>,
    } else {
    }
    return
  }
  func.func @transform_0(%arg0: i32, %arg1: i32, %arg2: i32) -> (i32, i32) {
    %c0_i32 = arith.constant 0 : i32
    return %arg0, %arg2 : i32, i32
  }
  func.func @transform_1(%arg0: i32, %arg1: i32, %arg2: i32) -> (i32, i32) {
    %c0_i32 = arith.constant 0 : i32
    return %arg2, %arg1 : i32, i32
  }
  func.func @transform_2(%arg0: i32, %arg1: i32, %arg2: i32) -> (i32, i32) {
    %c0_i32 = arith.constant 0 : i32
    %c0_i32_0 = arith.constant 0 : i32
    return %c0_i32, %arg1 : i32, i32
  }
  func.func @transform_3(%arg0: i32, %arg1: i32, %arg2: i32) -> (i32, i32) {
    %c0_i32 = arith.constant 0 : i32
    %c0_i32_0 = arith.constant 0 : i32
    return %c0_i32, %arg1 : i32, i32
  }
  func.func @transform_4(%arg0: i32, %arg1: i32, %arg2: i32) -> (i32, i32) {
    %c0_i32 = arith.constant 0 : i32
    return %arg0, %arg1 : i32, i32
  }
}

</mosaic_0001>

<bundles_post_ra>
// kernel: _basic_conv_forward.1
= control target key start
LH: loop header
LB: loop body
LE: loop exit
PB: predicated region body
PF: predicated region fallthrough
CT: control target
= control target key end

     0   :  { %vm398_vm0 = vcmask 392192   ;;  %s1960_s1 = inlined_call_operand.vmem [shape: bf16[48,128], index: 1, kind: input, shape index: {}]   ;;  %s1961_s0 = inlined_call_operand.vmem [shape: bf16[512,48], index: 0, kind: input, shape index: {}]   ;;  %s1962_s2 = inlined_call_operand.vmem [shape: f32[1,128], index: 2, kind: input, shape index: {}]   ;;  %s1963_s3 = inlined_call_operand.vmem [shape: f32[1,128], index: 3, kind: input, shape index: {}]   ;;  %s1964_s4 = inlined_call_operand.vmem [shape: f32[512,128], index: 4, kind: output, shape index: {}]  }
   0x1   :  { %v1433_v0 = vld [vmem:[%s1960_s1 + $0x10] sm:$0xff]   ;;  %v1434_v1 = vld [vmem:[%s1960_s1 + $0x8] sm:$0xff]   ;;  %v1435_v2 = vld [vmem:[%s1960_s1] sm:$0xff]  }
   0x2   :  { %1357 = vmatprep.subr.bf16.mxu0 %v1433_v0  ;;  %1427 = vmatprep.subr.bf16.mxu1 %v1433_v0  ;;  %v1436_v3 = vld [vmem:[%s1961_s0] sm:$0xff]   ;;  %v1438_v5 = vld [vmem:[%s1961_s0 + $0x8] sm:$0xff]   ;;  %v1440_v7 = vld [vmem:[%s1961_s0 + $0x10] sm:$0xff]  }
   0x3   :  { %1358 = vmatpush3.bf16.msra.mxu0 %v1433_v0  ;;  %1430 = vmatpush3.bf16.msra.mxu1 %v1433_v0  ;;  %v1437_v4 = vld [vmem:[%s1961_s0 + $0x80] sm:$0xff]   ;;  %v1439_v6 = vld [vmem:[%s1961_s0 + $0x88] sm:$0xff]   ;;  %v1441_v8 = vld [vmem:[%s1961_s0 + $0x90] sm:$0xff]  }
   0x4   :  { %1359 = vmatprep.subr.bf16.mxu0 %v1434_v1  ;;  %1428 = vmatprep.subr.bf16.mxu1 %v1434_v1  ;;  %v1442_v9 = vld [vmem:[%s1961_s0 + $0x18] sm:$0xff]   ;;  %v1444_v11 = vld [vmem:[%s1961_s0 + $0x20] sm:$0xff]   ;;  %v1446_v13 = vld [vmem:[%s1961_s0 + $0x28] sm:$0xff]  }
   0x5   :  { %1363 = vmatprep.mubr.msk.bf16.mxu0 %vm398_vm0, %v1436_v3  ;;  %1395 = vmatprep.mubr.msk.bf16.mxu1 %vm398_vm0, %v1437_v4  ;;  %v1443_v10 = vld [vmem:[%s1961_s0 + $0x98] sm:$0xff]   ;;  %v1445_v12 = vld [vmem:[%s1961_s0 + $0xa0] sm:$0xff]   ;;  %v1447_v14 = vld [vmem:[%s1961_s0 + $0xa8] sm:$0xff]  }
   0x6   :  { %v1448_v15 = vld [vmem:[%s1961_s0 + $0x30] sm:$0xff]   ;;  %v1450_v17 = vld [vmem:[%s1961_s0 + $0x38] sm:$0xff]   ;;  %v1452_v19 = vld [vmem:[%s1961_s0 + $0x40] sm:$0xff]  }
   0x7   :  { %1360 = vmatpush3.bf16.msra.mxu0 %v1434_v1  ;;  %1431 = vmatpush3.bf16.msra.mxu1 %v1434_v1  ;;  %v1449_v16 = vld [vmem:[%s1961_s0 + $0xb0] sm:$0xff]   ;;  %v1451_v18 = vld [vmem:[%s1961_s0 + $0xb8] sm:$0xff]   ;;  %v1453_v20 = vld [vmem:[%s1961_s0 + $0xc0] sm:$0xff]  }
   0x8   :  { %1361 = vmatprep.subr.bf16.mxu0 %v1435_v2  ;;  %1429 = vmatprep.subr.bf16.mxu1 %v1435_v2  ;;  %v1454_v21 = vld [vmem:[%s1961_s0 + $0x48] sm:$0xff]   ;;  %v1456_v23 = vld [vmem:[%s1961_s0 + $0x50] sm:$0xff]   ;;  %v1458_v25 = vld [vmem:[%s1961_s0 + $0x58] sm:$0xff]  }
   0x9   :  { %v1455_v22 = vld [vmem:[%s1961_s0 + $0xc8] sm:$0xff]   ;;  %v1457_v24 = vld [vmem:[%s1961_s0 + $0xd0] sm:$0xff]   ;;  %v1459_v26 = vld [vmem:[%s1961_s0 + $0xd8] sm:$0xff]  }
   0xa   :  { %v1460_v27 = vld [vmem:[%s1961_s0 + $0x60] sm:$0xff]   ;;  %v1462_v29 = vld [vmem:[%s1961_s0 + $0x68] sm:$0xff]   ;;  %v1464_v31 = vld [vmem:[%s1961_s0 + $0x70] sm:$0xff]  }
   0xb   :  { %1362 = vmatpush3.bf16.msra.mxu0 %v1435_v2  ;;  %1432 = vmatpush3.bf16.msra.mxu1 %v1435_v2  ;;  %v1461_v28 = vld [vmem:[%s1961_s0 + $0xe0] sm:$0xff]   ;;  %v1463_v30 = vld [vmem:[%s1961_s0 + $0xe8] sm:$0xff]   ;;  %v1465_v32 = vld [vmem:[%s1961_s0 + $0xf0] sm:$0xff]  }
   0xc   :  { %v1466_v33 = vld [vmem:[%s1961_s0 + $0x78] sm:$0xff]   ;;  %v1633_v35 = vld [vmem:[%s1962_s2] ss:$0 sm:$0xff] }
   0xd   :  { %v1467_v34 = vld [vmem:[%s1961_s0 + $0xf8] sm:$0xff]   ;;  %v1638_v37 = vld [vmem:[%s1963_s3] ss:$0 sm:$0xff] }
   0xe   :  { %1364 = vmatmul.mubr.msk.bf16.vlgmr.msra.gmra.mxu0 %vm398_vm0, %v1438_v5  ;;  %1396 = vmatmul.mubr.msk.bf16.vlgmr.msra.gmra.mxu1 %vm398_vm0, %v1439_v6 }
   0xf   :  { %1367 = vmatprep.mubr.msk.bf16.mxu0 %vm398_vm0, %v1440_v7  ;;  %1399 = vmatprep.mubr.msk.bf16.mxu1 %vm398_vm0, %v1441_v8 }
  0x16   :  { %1368 = vmatmul.mubr.msk.bf16.gmra.mxu0 %vm398_vm0, %v1442_v9  ;;  %1400 = vmatmul.mubr.msk.bf16.gmra.mxu1 %vm398_vm0, %v1443_v10 }
  0x17   :  { %1371 = vmatprep.mubr.msk.bf16.mxu0 %vm398_vm0, %v1444_v11  ;;  %1403 = vmatprep.mubr.msk.bf16.mxu1 %vm398_vm0, %v1445_v12 }
  0x1e   :  { %1372 = vmatmul.mubr.msk.bf16.gmra.mxu0 %vm398_vm0, %v1446_v13  ;;  %1404 = vmatmul.mubr.msk.bf16.gmra.mxu1 %vm398_vm0, %v1447_v14 }
  0x1f   :  { %1375 = vmatprep.mubr.msk.bf16.mxu0 %vm398_vm0, %v1448_v15  ;;  %1407 = vmatprep.mubr.msk.bf16.mxu1 %vm398_vm0, %v1449_v16 }
  0x26   :  { %1376 = vmatmul.mubr.msk.bf16.gmra.mxu0 %vm398_vm0, %v1450_v17  ;;  %1408 = vmatmul.mubr.msk.bf16.gmra.mxu1 %vm398_vm0, %v1451_v18 }
  0x27   :  { %1379 = vmatprep.mubr.msk.bf16.mxu0 %vm398_vm0, %v1452_v19  ;;  %1411 = vmatprep.mubr.msk.bf16.mxu1 %vm398_vm0, %v1453_v20 }
  0x2e   :  { %1380 = vmatmul.mubr.msk.bf16.gmra.mxu0 %vm398_vm0, %v1454_v21  ;;  %1412 = vmatmul.mubr.msk.bf16.gmra.mxu1 %vm398_vm0, %v1455_v22 }
  0x2f   :  { %1383 = vmatprep.mubr.msk.bf16.mxu0 %vm398_vm0, %v1456_v23  ;;  %1415 = vmatprep.mubr.msk.bf16.mxu1 %vm398_vm0, %v1457_v24 }
  0x36   :  { %1384 = vmatmul.mubr.msk.bf16.gmra.mxu0 %vm398_vm0, %v1458_v25  ;;  %1416 = vmatmul.mubr.msk.bf16.gmra.mxu1 %vm398_vm0, %v1459_v26 }
  0x37   :  { %1387 = vmatprep.mubr.msk.bf16.mxu0 %vm398_vm0, %v1460_v27  ;;  %1419 = vmatprep.mubr.msk.bf16.mxu1 %vm398_vm0, %v1461_v28 }
  0x3e   :  { %1388 = vmatmul.mubr.msk.bf16.gmra.mxu0 %vm398_vm0, %v1462_v29  ;;  %1420 = vmatmul.mubr.msk.bf16.gmra.mxu1 %vm398_vm0, %v1463_v30 }
  0x3f   :  { %1391 = vmatprep.mubr.msk.bf16.mxu0 %vm398_vm0, %v1464_v31  ;;  %1423 = vmatprep.mubr.msk.bf16.mxu1 %vm398_vm0, %v1465_v32 }
  0x46   :  { %1392 = vmatmul.mubr.msk.bf16.gmra.mxu0 %vm398_vm0, %v1466_v33  ;;  %1424 = vmatmul.mubr.msk.bf16.gmra.mxu1 %vm398_vm0, %v1467_v34 }
  0xce   :  { %v1365_v36 = vpop.f32.mrf.mxu0  ;;  %v1397_v38 = vpop.f32.mrf.mxu1 }
  0xcf   :  { %v988_v39 = vmul.f32 %v1365_v36, %v1633_v35  ;;  %v1020_v40 = vmul.f32 %v1397_v38, %v1633_v35 }
  0xd0   :  { %v529_v41 = vpop.f32.mrf.mxu0  ;;  %v657_v42 = vpop.f32.mrf.mxu1 }
  0xd1   :  { %v1059_v43 = vadd.f32 %v1638_v37, %v988_v39  ;;  %v1091_v44 = vadd.f32 %v1638_v37, %v1020_v40  ;;  %v986_v45 = vmul.f32 %v1633_v35, %v529_v41  ;;  %v1018_v46 = vmul.f32 %v1633_v35, %v657_v42 }
  0xd2   :  { %v1366_v47 = vpop.f32.mrf.mxu0  ;;  %v1398_v48 = vpop.f32.mrf.mxu1 }
  0xd3   :  { %v1123_v49 = vmax.f32 %v1059_v43, 0.0  ;;  %v1155_v50 = vmax.f32 %v1091_v44, 0.0  ;;  %v1057_v51 = vadd.f32 %v1638_v37, %v986_v45  ;;  %v1089_v52 = vadd.f32 %v1638_v37, %v1018_v46 }
  0xd4   :  { %v989_v53 = vmul.f32 %v1366_v47, %v1633_v35  ;;  %v1021_v54 = vmul.f32 %v1398_v48, %v1633_v35  ;;  %v532_v55 = vpop.f32.mrf.mxu0  ;;  %v660_v56 = vpop.f32.mrf.mxu1 }
  0xd5   :  { %1187 = vst [vmem:[%s1964_s4 + $0x10] sm:$0xff] %v1123_v49  ;;  %1219 = vst [vmem:[%s1964_s4 + $0x110] sm:$0xff] %v1155_v50  ;;  %v1121_v57 = vmax.f32 %v1057_v51, 0.0  ;;  %v1153_v58 = vmax.f32 %v1089_v52, 0.0  ;;  %v987_v59 = vmul.f32 %v1633_v35, %v532_v55  ;;  %v1019_v60 = vmul.f32 %v1633_v35, %v660_v56 }
  0xd6   :  { %v1060_v61 = vadd.f32 %v1638_v37, %v989_v53  ;;  %v1092_v62 = vadd.f32 %v1638_v37, %v1021_v54  ;;  %v1369_v63 = vpop.f32.mrf.mxu0  ;;  %v1401_v0 = vpop.f32.mrf.mxu1 }
  0xd7   :  { %1185 = vst [vmem:[%s1964_s4] sm:$0xff] %v1121_v57  ;;  %1217 = vst [vmem:[%s1964_s4 + $0x100] sm:$0xff] %v1153_v58  ;;  %v1058_v1 = vadd.f32 %v1638_v37, %v987_v59  ;;  %v1090_v2 = vadd.f32 %v1638_v37, %v1019_v60  ;;  %v992_v3 = vmul.f32 %v1369_v63, %v1633_v35 }
  0xd8   :  { %v1024_v4 = vmul.f32 %v1401_v0, %v1633_v35  ;;  %v1124_v5 = vmax.f32 %v1060_v61, 0.0  ;;  %v1156_v6 = vmax.f32 %v1092_v62, 0.0  ;;  %v545_v7 = vpop.f32.mrf.mxu0  ;;  %v673_v8 = vpop.f32.mrf.mxu1 }
  0xd9   :  { %v1122_v9 = vmax.f32 %v1058_v1, 0.0  ;;  %v1154_v10 = vmax.f32 %v1090_v2, 0.0  ;;  %v1063_v11 = vadd.f32 %v1638_v37, %v992_v3  ;;  %v990_v13 = vmul.f32 %v1633_v35, %v545_v7 }
  0xda   :  { %v1095_v12 = vadd.f32 %v1638_v37, %v1024_v4  ;;  %1188 = vst [vmem:[%s1964_s4 + $0x18] sm:$0xff] %v1124_v5  ;;  %1220 = vst [vmem:[%s1964_s4 + $0x118] sm:$0xff] %v1156_v6  ;;  %v1022_v14 = vmul.f32 %v1633_v35, %v673_v8  ;;  %v1370_v15 = vpop.f32.mrf.mxu0  ;;  %v1402_v16 = vpop.f32.mrf.mxu1 }
  0xdb   :  { %1186 = vst [vmem:[%s1964_s4 + $0x8] sm:$0xff] %v1122_v9  ;;  %1218 = vst [vmem:[%s1964_s4 + $0x108] sm:$0xff] %v1154_v10  ;;  %v1127_v17 = vmax.f32 %v1063_v11, 0.0  ;;  %v993_v19 = vmul.f32 %v1370_v15, %v1633_v35  ;;  %v1025_v20 = vmul.f32 %v1402_v16, %v1633_v35  ;;  %v1061_v21 = vadd.f32 %v1638_v37, %v990_v13 }
  0xdc   :  { %v1159_v18 = vmax.f32 %v1095_v12, 0.0  ;;  %v1093_v22 = vadd.f32 %v1638_v37, %v1022_v14  ;;  %v548_v23 = vpop.f32.mrf.mxu0  ;;  %v676_v24 = vpop.f32.mrf.mxu1 }
  0xdd   :  { %1191 = vst [vmem:[%s1964_s4 + $0x30] sm:$0xff] %v1127_v17  ;;  %v1064_v25 = vadd.f32 %v1638_v37, %v993_v19  ;;  %v1096_v26 = vadd.f32 %v1638_v37, %v1025_v20  ;;  %v991_v27 = vmul.f32 %v1633_v35, %v548_v23  ;;  %v1023_v28 = vmul.f32 %v1633_v35, %v676_v24 }
  0xde   :  { %1223 = vst [vmem:[%s1964_s4 + $0x130] sm:$0xff] %v1159_v18  ;;  %v1125_v29 = vmax.f32 %v1061_v21, 0.0  ;;  %v1157_v30 = vmax.f32 %v1093_v22, 0.0  ;;  %v1373_v31 = vpop.f32.mrf.mxu0  ;;  %v1405_v32 = vpop.f32.mrf.mxu1 }
  0xdf   :  { %v1128_v33 = vmax.f32 %v1064_v25, 0.0  ;;  %v1160_v34 = vmax.f32 %v1096_v26, 0.0  ;;  %v1062_v36 = vadd.f32 %v1638_v37, %v991_v27  ;;  %v1094_v38 = vadd.f32 %v1638_v37, %v1023_v28 }
  0xe0   :  { %1189 = vst [vmem:[%s1964_s4 + $0x20] sm:$0xff] %v1125_v29  ;;  %1221 = vst [vmem:[%s1964_s4 + $0x120] sm:$0xff] %v1157_v30  ;;  %v996_v39 = vmul.f32 %v1373_v31, %v1633_v35  ;;  %v1028_v40 = vmul.f32 %v1405_v32, %v1633_v35  ;;  %v561_v41 = vpop.f32.mrf.mxu0  ;;  %v689_v42 = vpop.f32.mrf.mxu1 }
  0xe1   :  { %1192 = vst [vmem:[%s1964_s4 + $0x38] sm:$0xff] %v1128_v33  ;;  %1224 = vst [vmem:[%s1964_s4 + $0x138] sm:$0xff] %v1160_v34  ;;  %v1126_v43 = vmax.f32 %v1062_v36, 0.0  ;;  %v1158_v44 = vmax.f32 %v1094_v38, 0.0  ;;  %v994_v45 = vmul.f32 %v1633_v35, %v561_v41  ;;  %v1026_v46 = vmul.f32 %v1633_v35, %v689_v42 }
  0xe2   :  { %v1067_v47 = vadd.f32 %v1638_v37, %v996_v39  ;;  %v1099_v48 = vadd.f32 %v1638_v37, %v1028_v40  ;;  %v1374_v49 = vpop.f32.mrf.mxu0  ;;  %v1406_v50 = vpop.f32.mrf.mxu1 }
  0xe3   :  { %1190 = vst [vmem:[%s1964_s4 + $0x28] sm:$0xff] %v1126_v43  ;;  %1222 = vst [vmem:[%s1964_s4 + $0x128] sm:$0xff] %v1158_v44  ;;  %v1065_v51 = vadd.f32 %v1638_v37, %v994_v45  ;;  %v1097_v52 = vadd.f32 %v1638_v37, %v1026_v46  ;;  %v997_v53 = vmul.f32 %v1374_v49, %v1633_v35 }
  0xe4   :  { %v1029_v54 = vmul.f32 %v1406_v50, %v1633_v35  ;;  %v1131_v55 = vmax.f32 %v1067_v47, 0.0  ;;  %v1163_v56 = vmax.f32 %v1099_v48, 0.0  ;;  %v564_v57 = vpop.f32.mrf.mxu0  ;;  %v692_v58 = vpop.f32.mrf.mxu1 }
  0xe5   :  { %v1129_v59 = vmax.f32 %v1065_v51, 0.0  ;;  %v1161_v60 = vmax.f32 %v1097_v52, 0.0  ;;  %v1068_v61 = vadd.f32 %v1638_v37, %v997_v53  ;;  %v995_v63 = vmul.f32 %v1633_v35, %v564_v57 }
  0xe6   :  { %v1100_v62 = vadd.f32 %v1638_v37, %v1029_v54  ;;  %1195 = vst [vmem:[%s1964_s4 + $0x50] sm:$0xff] %v1131_v55  ;;  %1227 = vst [vmem:[%s1964_s4 + $0x150] sm:$0xff] %v1163_v56  ;;  %v1027_v0 = vmul.f32 %v1633_v35, %v692_v58  ;;  %v1377_v1 = vpop.f32.mrf.mxu0  ;;  %v1409_v2 = vpop.f32.mrf.mxu1 }
  0xe7   :  { %1193 = vst [vmem:[%s1964_s4 + $0x40] sm:$0xff] %v1129_v59  ;;  %1225 = vst [vmem:[%s1964_s4 + $0x140] sm:$0xff] %v1161_v60  ;;  %v1132_v3 = vmax.f32 %v1068_v61, 0.0  ;;  %v1000_v5 = vmul.f32 %v1377_v1, %v1633_v35  ;;  %v1032_v6 = vmul.f32 %v1409_v2, %v1633_v35  ;;  %v1066_v7 = vadd.f32 %v1638_v37, %v995_v63 }
  0xe8   :  { %v1164_v4 = vmax.f32 %v1100_v62, 0.0  ;;  %v1098_v8 = vadd.f32 %v1638_v37, %v1027_v0  ;;  %v577_v9 = vpop.f32.mrf.mxu0  ;;  %v705_v10 = vpop.f32.mrf.mxu1 }
  0xe9   :  { %1196 = vst [vmem:[%s1964_s4 + $0x58] sm:$0xff] %v1132_v3  ;;  %v1071_v11 = vadd.f32 %v1638_v37, %v1000_v5  ;;  %v1103_v12 = vadd.f32 %v1638_v37, %v1032_v6  ;;  %v998_v13 = vmul.f32 %v1633_v35, %v577_v9  ;;  %v1030_v14 = vmul.f32 %v1633_v35, %v705_v10 }
  0xea   :  { %1228 = vst [vmem:[%s1964_s4 + $0x158] sm:$0xff] %v1164_v4  ;;  %v1130_v15 = vmax.f32 %v1066_v7, 0.0  ;;  %v1162_v16 = vmax.f32 %v1098_v8, 0.0  ;;  %v1378_v17 = vpop.f32.mrf.mxu0  ;;  %v1410_v18 = vpop.f32.mrf.mxu1 }
  0xeb   :  { %v1135_v19 = vmax.f32 %v1071_v11, 0.0  ;;  %v1167_v20 = vmax.f32 %v1103_v12, 0.0  ;;  %v1069_v21 = vadd.f32 %v1638_v37, %v998_v13  ;;  %v1101_v22 = vadd.f32 %v1638_v37, %v1030_v14 }
  0xec   :  { %1194 = vst [vmem:[%s1964_s4 + $0x48] sm:$0xff] %v1130_v15  ;;  %1226 = vst [vmem:[%s1964_s4 + $0x148] sm:$0xff] %v1162_v16  ;;  %v1001_v23 = vmul.f32 %v1378_v17, %v1633_v35  ;;  %v1033_v24 = vmul.f32 %v1410_v18, %v1633_v35  ;;  %v580_v25 = vpop.f32.mrf.mxu0  ;;  %v708_v26 = vpop.f32.mrf.mxu1 }
  0xed   :  { %1199 = vst [vmem:[%s1964_s4 + $0x70] sm:$0xff] %v1135_v19  ;;  %1231 = vst [vmem:[%s1964_s4 + $0x170] sm:$0xff] %v1167_v20  ;;  %v1133_v27 = vmax.f32 %v1069_v21, 0.0  ;;  %v1165_v28 = vmax.f32 %v1101_v22, 0.0  ;;  %v999_v29 = vmul.f32 %v1633_v35, %v580_v25  ;;  %v1031_v30 = vmul.f32 %v1633_v35, %v708_v26 }
  0xee   :  { %v1072_v31 = vadd.f32 %v1638_v37, %v1001_v23  ;;  %v1104_v32 = vadd.f32 %v1638_v37, %v1033_v24  ;;  %v1381_v33 = vpop.f32.mrf.mxu0  ;;  %v1413_v34 = vpop.f32.mrf.mxu1 }
  0xef   :  { %1197 = vst [vmem:[%s1964_s4 + $0x60] sm:$0xff] %v1133_v27  ;;  %1229 = vst [vmem:[%s1964_s4 + $0x160] sm:$0xff] %v1165_v28  ;;  %v1070_v36 = vadd.f32 %v1638_v37, %v999_v29  ;;  %v1102_v38 = vadd.f32 %v1638_v37, %v1031_v30  ;;  %v1004_v39 = vmul.f32 %v1381_v33, %v1633_v35 }
  0xf0   :  { %v1036_v40 = vmul.f32 %v1413_v34, %v1633_v35  ;;  %v1136_v41 = vmax.f32 %v1072_v31, 0.0  ;;  %v1168_v42 = vmax.f32 %v1104_v32, 0.0  ;;  %v593_v43 = vpop.f32.mrf.mxu0  ;;  %v721_v44 = vpop.f32.mrf.mxu1 }
  0xf1   :  { %v1134_v45 = vmax.f32 %v1070_v36, 0.0  ;;  %v1166_v46 = vmax.f32 %v1102_v38, 0.0  ;;  %v1075_v47 = vadd.f32 %v1638_v37, %v1004_v39  ;;  %v1002_v49 = vmul.f32 %v1633_v35, %v593_v43 }
  0xf2   :  { %v1107_v48 = vadd.f32 %v1638_v37, %v1036_v40  ;;  %1200 = vst [vmem:[%s1964_s4 + $0x78] sm:$0xff] %v1136_v41  ;;  %1232 = vst [vmem:[%s1964_s4 + $0x178] sm:$0xff] %v1168_v42  ;;  %v1034_v50 = vmul.f32 %v1633_v35, %v721_v44  ;;  %v1382_v51 = vpop.f32.mrf.mxu0  ;;  %v1414_v52 = vpop.f32.mrf.mxu1 }
  0xf3   :  { %1198 = vst [vmem:[%s1964_s4 + $0x68] sm:$0xff] %v1134_v45  ;;  %1230 = vst [vmem:[%s1964_s4 + $0x168] sm:$0xff] %v1166_v46  ;;  %v1139_v53 = vmax.f32 %v1075_v47, 0.0  ;;  %v1005_v55 = vmul.f32 %v1382_v51, %v1633_v35  ;;  %v1037_v56 = vmul.f32 %v1414_v52, %v1633_v35  ;;  %v1073_v57 = vadd.f32 %v1638_v37, %v1002_v49 }
  0xf4   :  { %v1171_v54 = vmax.f32 %v1107_v48, 0.0  ;;  %v1105_v58 = vadd.f32 %v1638_v37, %v1034_v50  ;;  %v596_v59 = vpop.f32.mrf.mxu0  ;;  %v724_v60 = vpop.f32.mrf.mxu1 }
  0xf5   :  { %1203 = vst [vmem:[%s1964_s4 + $0x90] sm:$0xff] %v1139_v53  ;;  %v1076_v61 = vadd.f32 %v1638_v37, %v1005_v55  ;;  %v1108_v62 = vadd.f32 %v1638_v37, %v1037_v56  ;;  %v1003_v63 = vmul.f32 %v1633_v35, %v596_v59  ;;  %v1035_v0 = vmul.f32 %v1633_v35, %v724_v60 }
  0xf6   :  { %1235 = vst [vmem:[%s1964_s4 + $0x190] sm:$0xff] %v1171_v54  ;;  %v1137_v1 = vmax.f32 %v1073_v57, 0.0  ;;  %v1169_v2 = vmax.f32 %v1105_v58, 0.0  ;;  %v1385_v3 = vpop.f32.mrf.mxu0  ;;  %v1417_v4 = vpop.f32.mrf.mxu1 }
  0xf7   :  { %v1140_v5 = vmax.f32 %v1076_v61, 0.0  ;;  %v1172_v6 = vmax.f32 %v1108_v62, 0.0  ;;  %v1074_v7 = vadd.f32 %v1638_v37, %v1003_v63  ;;  %v1106_v8 = vadd.f32 %v1638_v37, %v1035_v0 }
  0xf8   :  { %1201 = vst [vmem:[%s1964_s4 + $0x80] sm:$0xff] %v1137_v1  ;;  %1233 = vst [vmem:[%s1964_s4 + $0x180] sm:$0xff] %v1169_v2  ;;  %v1008_v9 = vmul.f32 %v1385_v3, %v1633_v35  ;;  %v1040_v10 = vmul.f32 %v1417_v4, %v1633_v35  ;;  %v609_v11 = vpop.f32.mrf.mxu0  ;;  %v737_v12 = vpop.f32.mrf.mxu1 }
  0xf9   :  { %1204 = vst [vmem:[%s1964_s4 + $0x98] sm:$0xff] %v1140_v5  ;;  %1236 = vst [vmem:[%s1964_s4 + $0x198] sm:$0xff] %v1172_v6  ;;  %v1138_v13 = vmax.f32 %v1074_v7, 0.0  ;;  %v1170_v14 = vmax.f32 %v1106_v8, 0.0  ;;  %v1006_v15 = vmul.f32 %v1633_v35, %v609_v11  ;;  %v1038_v16 = vmul.f32 %v1633_v35, %v737_v12 }
  0xfa   :  { %v1079_v17 = vadd.f32 %v1638_v37, %v1008_v9  ;;  %v1111_v18 = vadd.f32 %v1638_v37, %v1040_v10  ;;  %v1386_v19 = vpop.f32.mrf.mxu0  ;;  %v1418_v20 = vpop.f32.mrf.mxu1 }
  0xfb   :  { %1202 = vst [vmem:[%s1964_s4 + $0x88] sm:$0xff] %v1138_v13  ;;  %1234 = vst [vmem:[%s1964_s4 + $0x188] sm:$0xff] %v1170_v14  ;;  %v1077_v21 = vadd.f32 %v1638_v37, %v1006_v15  ;;  %v1109_v22 = vadd.f32 %v1638_v37, %v1038_v16  ;;  %v1009_v23 = vmul.f32 %v1386_v19, %v1633_v35 }
  0xfc   :  { %v1041_v24 = vmul.f32 %v1418_v20, %v1633_v35  ;;  %v1143_v25 = vmax.f32 %v1079_v17, 0.0  ;;  %v1175_v26 = vmax.f32 %v1111_v18, 0.0  ;;  %v612_v27 = vpop.f32.mrf.mxu0  ;;  %v740_v28 = vpop.f32.mrf.mxu1 }
  0xfd   :  { %v1141_v29 = vmax.f32 %v1077_v21, 0.0  ;;  %v1173_v30 = vmax.f32 %v1109_v22, 0.0  ;;  %v1080_v31 = vadd.f32 %v1638_v37, %v1009_v23  ;;  %v1007_v33 = vmul.f32 %v1633_v35, %v612_v27 }
  0xfe   :  { %v1112_v32 = vadd.f32 %v1638_v37, %v1041_v24  ;;  %1207 = vst [vmem:[%s1964_s4 + $0xb0] sm:$0xff] %v1143_v25  ;;  %1239 = vst [vmem:[%s1964_s4 + $0x1b0] sm:$0xff] %v1175_v26  ;;  %v1039_v34 = vmul.f32 %v1633_v35, %v740_v28  ;;  %v1389_v36 = vpop.f32.mrf.mxu0  ;;  %v1421_v38 = vpop.f32.mrf.mxu1 }
  0xff   :  { %1205 = vst [vmem:[%s1964_s4 + $0xa0] sm:$0xff] %v1141_v29  ;;  %1237 = vst [vmem:[%s1964_s4 + $0x1a0] sm:$0xff] %v1173_v30  ;;  %v1144_v39 = vmax.f32 %v1080_v31, 0.0  ;;  %v1012_v41 = vmul.f32 %v1389_v36, %v1633_v35  ;;  %v1044_v42 = vmul.f32 %v1421_v38, %v1633_v35  ;;  %v1078_v43 = vadd.f32 %v1638_v37, %v1007_v33 }
 0x100   :  { %v1176_v40 = vmax.f32 %v1112_v32, 0.0  ;;  %v1110_v44 = vadd.f32 %v1638_v37, %v1039_v34  ;;  %v625_v45 = vpop.f32.mrf.mxu0  ;;  %v753_v46 = vpop.f32.mrf.mxu1 }
 0x101   :  { %1208 = vst [vmem:[%s1964_s4 + $0xb8] sm:$0xff] %v1144_v39  ;;  %v1083_v47 = vadd.f32 %v1638_v37, %v1012_v41  ;;  %v1115_v48 = vadd.f32 %v1638_v37, %v1044_v42  ;;  %v1010_v49 = vmul.f32 %v1633_v35, %v625_v45  ;;  %v1042_v50 = vmul.f32 %v1633_v35, %v753_v46 }
 0x102   :  { %1240 = vst [vmem:[%s1964_s4 + $0x1b8] sm:$0xff] %v1176_v40  ;;  %v1142_v51 = vmax.f32 %v1078_v43, 0.0  ;;  %v1174_v52 = vmax.f32 %v1110_v44, 0.0  ;;  %v1390_v53 = vpop.f32.mrf.mxu0  ;;  %v1422_v54 = vpop.f32.mrf.mxu1 }
 0x103   :  { %v1147_v55 = vmax.f32 %v1083_v47, 0.0  ;;  %v1179_v56 = vmax.f32 %v1115_v48, 0.0  ;;  %v1081_v57 = vadd.f32 %v1638_v37, %v1010_v49  ;;  %v1113_v58 = vadd.f32 %v1638_v37, %v1042_v50 }
 0x104   :  { %1206 = vst [vmem:[%s1964_s4 + $0xa8] sm:$0xff] %v1142_v51  ;;  %1238 = vst [vmem:[%s1964_s4 + $0x1a8] sm:$0xff] %v1174_v52  ;;  %v1013_v59 = vmul.f32 %v1390_v53, %v1633_v35  ;;  %v1045_v60 = vmul.f32 %v1422_v54, %v1633_v35  ;;  %v628_v61 = vpop.f32.mrf.mxu0  ;;  %v756_v62 = vpop.f32.mrf.mxu1 }
 0x105   :  { %1211 = vst [vmem:[%s1964_s4 + $0xd0] sm:$0xff] %v1147_v55  ;;  %1243 = vst [vmem:[%s1964_s4 + $0x1d0] sm:$0xff] %v1179_v56  ;;  %v1145_v63 = vmax.f32 %v1081_v57, 0.0  ;;  %v1177_v0 = vmax.f32 %v1113_v58, 0.0  ;;  %v1011_v1 = vmul.f32 %v1633_v35, %v628_v61  ;;  %v1043_v2 = vmul.f32 %v1633_v35, %v756_v62 }
 0x106   :  { %v1084_v3 = vadd.f32 %v1638_v37, %v1013_v59  ;;  %v1116_v4 = vadd.f32 %v1638_v37, %v1045_v60  ;;  %v1393_v5 = vpop.f32.mrf.mxu0  ;;  %v1425_v6 = vpop.f32.mrf.mxu1 }
 0x107   :  { %1209 = vst [vmem:[%s1964_s4 + $0xc0] sm:$0xff] %v1145_v63  ;;  %1241 = vst [vmem:[%s1964_s4 + $0x1c0] sm:$0xff] %v1177_v0  ;;  %v1082_v7 = vadd.f32 %v1638_v37, %v1011_v1  ;;  %v1114_v8 = vadd.f32 %v1638_v37, %v1043_v2  ;;  %v1016_v9 = vmul.f32 %v1393_v5, %v1633_v35 }
 0x108   :  { %v1048_v10 = vmul.f32 %v1425_v6, %v1633_v35  ;;  %v1148_v11 = vmax.f32 %v1084_v3, 0.0  ;;  %v1180_v12 = vmax.f32 %v1116_v4, 0.0  ;;  %v641_v13 = vpop.f32.mrf.mxu0  ;;  %v769_v14 = vpop.f32.mrf.mxu1 }
 0x109   :  { %v1146_v15 = vmax.f32 %v1082_v7, 0.0  ;;  %v1178_v16 = vmax.f32 %v1114_v8, 0.0  ;;  %v1087_v17 = vadd.f32 %v1638_v37, %v1016_v9  ;;  %v1014_v19 = vmul.f32 %v1633_v35, %v641_v13 }
 0x10a   :  { %v1119_v18 = vadd.f32 %v1638_v37, %v1048_v10  ;;  %1212 = vst [vmem:[%s1964_s4 + $0xd8] sm:$0xff] %v1148_v11  ;;  %1244 = vst [vmem:[%s1964_s4 + $0x1d8] sm:$0xff] %v1180_v12  ;;  %v1046_v20 = vmul.f32 %v1633_v35, %v769_v14  ;;  %v1394_v21 = vpop.f32.mrf.mxu0  ;;  %v1426_v22 = vpop.f32.mrf.mxu1 }
 0x10b   :  { %1210 = vst [vmem:[%s1964_s4 + $0xc8] sm:$0xff] %v1146_v15  ;;  %1242 = vst [vmem:[%s1964_s4 + $0x1c8] sm:$0xff] %v1178_v16  ;;  %v1151_v23 = vmax.f32 %v1087_v17, 0.0  ;;  %v1017_v25 = vmul.f32 %v1394_v21, %v1633_v35  ;;  %v1049_v26 = vmul.f32 %v1426_v22, %v1633_v35  ;;  %v1085_v27 = vadd.f32 %v1638_v37, %v1014_v19 }
 0x10c   :  { %v1183_v24 = vmax.f32 %v1119_v18, 0.0  ;;  %v1117_v28 = vadd.f32 %v1638_v37, %v1046_v20  ;;  %v644_v29 = vpop.f32.mrf.mxu0  ;;  %v772_v30 = vpop.f32.mrf.mxu1 }
 0x10d   :  { %1215 = vst [vmem:[%s1964_s4 + $0xf0] sm:$0xff] %v1151_v23  ;;  %v1088_v31 = vadd.f32 %v1638_v37, %v1017_v25  ;;  %v1120_v32 = vadd.f32 %v1638_v37, %v1049_v26  ;;  %v1015_v33 = vmul.f32 %v1633_v35, %v644_v29  ;;  %v1047_v34 = vmul.f32 %v1633_v35, %v772_v30 }
 0x10e   :  { %1247 = vst [vmem:[%s1964_s4 + $0x1f0] sm:$0xff] %v1183_v24  ;;  %v1149_v36 = vmax.f32 %v1085_v27, 0.0  ;;  %v1181_v38 = vmax.f32 %v1117_v28, 0.0 }
 0x10f   :  { %v1152_v39 = vmax.f32 %v1088_v31, 0.0  ;;  %v1184_v40 = vmax.f32 %v1120_v32, 0.0  ;;  %v1086_v41 = vadd.f32 %v1638_v37, %v1015_v33  ;;  %v1118_v42 = vadd.f32 %v1638_v37, %v1047_v34 }
 0x110   :  { %1213 = vst [vmem:[%s1964_s4 + $0xe0] sm:$0xff] %v1149_v36  ;;  %1245 = vst [vmem:[%s1964_s4 + $0x1e0] sm:$0xff] %v1181_v38 }
 0x111   :  { %1216 = vst [vmem:[%s1964_s4 + $0xf8] sm:$0xff] %v1152_v39  ;;  %1248 = vst [vmem:[%s1964_s4 + $0x1f8] sm:$0xff] %v1184_v40  ;;  %v1150_v35 = vmax.f32 %v1086_v41, 0.0  ;;  %v1182_v43 = vmax.f32 %v1118_v42, 0.0 }
 0x113   :  { %1214 = vst [vmem:[%s1964_s4 + $0xe8] sm:$0xff] %v1150_v35  ;;  %1246 = vst [vmem:[%s1964_s4 + $0x1e8] sm:$0xff] %v1182_v43 }

</bundles_post_ra>
